<compile_context>
chip_gen: v7x
topology: tpu7x:2x2x1
jax: 0.10.0
libtpu: 0.0.40
codegen_flags: <defaults>
</compile_context>

<pallas_src>
import functools

import jax
import jax.numpy as jnp
from jax import lax
from jax.experimental import pallas as pl
from jax.experimental.pallas import tpu as pltpu

CLASS_NUM = 50              # forward hard-codes reshape(-1, 50)
_DEFAULT_TILE_ROWS = 8192   # rows on the lane axis; ~4.6 MiB double-buffered


def _round_up(x, m):
    return (x + m - 1) // m * m


def _focal_loss_kernel(x_ref, t_ref, w_ref, out_ref, *, gamma):
    x = x_ref[...].astype(jnp.float32)     # (C, TN)  logits, class on sublanes
    t = t_ref[...]                         # (1, TN)  int32 target ids
    w = w_ref[...]                         # (1, TN)  f32 per-row weights (0 on padding)
    c, tn = x.shape

    # ---- log-sum-exp gather of the target-class log-prob (no full softmax) --
    m = jnp.max(x, axis=0, keepdims=True)                       # (1, TN)
    s = jnp.sum(jnp.exp(x - m), axis=0, keepdims=True)          # (1, TN)
    cls = lax.broadcasted_iota(jnp.int32, (c, tn), 0)
    x_t = jnp.sum(jnp.where(cls == t, x, 0.0), axis=0, keepdims=True)
    logp = (x_t - m) - jnp.log(s)          # log softmax[target], always finite
    p = jnp.exp(logp)

    # ---- focal factor; static integer gamma -> unrolled multiplies (no pow) -
    one_minus = 1.0 - p
    g = float(gamma)
    if g.is_integer() and 0 <= int(g) <= 16:
        focal = jnp.ones_like(one_minus)
        for _ in range(int(g)):
            focal = focal * one_minus
    else:
        focal = jnp.power(one_minus, g)

    loss = -focal * logp                   # (1, TN), lane-dense
    partial = jnp.sum(loss * w)            # padded rows carry w == 0 -> contribute 0
    out_ref[...] = jnp.full(out_ref.shape, partial, dtype=jnp.float32)


def focal_loss(inputs, targets, weights, *, gamma=2.0, size_average=True,
               tile_rows=_DEFAULT_TILE_ROWS):
    """inputs: (B, T, 50) float (any float dtype); targets: (B, T) int;
    weights: (B,) float."""
    b = targets.shape[0]
    x = inputs.reshape(-1, CLASS_NUM)      # (N, C) native dtype; cast in-kernel
    n = x.shape[0]
    assert n % b == 0, "rows must split evenly across the batch"
    t_per_b = n // b

    # Tile size: multiple of 128 lanes, large enough to amortize the ~0.35 us
    # per-step overhead, capped near N/2 so v7x's two TensorCores both get a
    # tile of the "parallel" grid axis.
    tn = max(128, (int(tile_rows) // 128) * 128)
    tn = min(tn, max(128, _round_up((n + 1) // 2, 128)))
    n_pad = _round_up(n, tn)
    grid = n_pad // tn
    pad = n_pad - n

    # Class axis -> sublanes, rows -> lanes.  Padded rows get zero logits and
    # zero weight, so they contribute exactly 0 (no in-kernel masking needed).
    xt = x.T                                                    # (C, N)
    t_row = targets.reshape(1, n).astype(jnp.int32)             # (1, N)
    w_row = jnp.repeat(weights.astype(jnp.float32), t_per_b).reshape(1, n)
    if pad:
        xt = jnp.pad(xt, ((0, 0), (0, pad)))
        t_row = jnp.pad(t_row, ((0, 0), (0, pad)))
        w_row = jnp.pad(w_row, ((0, 0), (0, pad)))

    kernel = functools.partial(_focal_loss_kernel, gamma=float(gamma))

    bytes_in = (n_pad * CLASS_NUM * x.dtype.itemsize   # logits
                + n_pad * 4                            # targets
                + n_pad * 4)                           # row weights
    cost = pl.CostEstimate(
        flops=10 * n_pad * CLASS_NUM,
        transcendentals=n_pad * CLASS_NUM + 2 * n_pad,
        bytes_accessed=bytes_in + grid * 128 * 4,
    )

    partials = pl.pallas_call(
        kernel,
        out_shape=jax.ShapeDtypeStruct((grid, 1, 128), jnp.float32),
        grid=(grid,),
        in_specs=[
            pl.BlockSpec((CLASS_NUM, tn), lambda i: (0, i)),    # logits (C, tn)
            pl.BlockSpec((1, tn), lambda i: (0, i)),            # target-id row
            pl.BlockSpec((1, tn), lambda i: (0, i)),            # per-row weights
        ],
        out_specs=pl.BlockSpec((1, 1, 128), lambda i: (i, 0, 0)),
        compiler_params=pltpu.CompilerParams(
            dimension_semantics=("parallel",)),
        cost_estimate=cost,
    )(xt, t_row, w_row)

    total = jnp.sum(partials[:, 0, 0])
    if size_average:
        return total / jnp.float32(n)
    return total


def focal_loss_ref(inputs, targets, weights, *, gamma=2.0, size_average=True):
    """Pure-JAX reference mirroring the PyTorch forward."""
    x = inputs.reshape(-1, CLASS_NUM).astype(jnp.float32)
    p = jax.nn.softmax(x, axis=1)
    mask = jax.nn.one_hot(targets.reshape(-1), CLASS_NUM, dtype=jnp.float32)
    probs = jnp.sum(p * mask, axis=1, keepdims=True)
    bl = -1.0 * jnp.power(1.0 - probs, gamma) * jnp.log(probs)
    bl = bl.reshape(targets.shape[0], -1) * weights[:, None]
    return jnp.mean(bl) if size_average else jnp.sum(bl)


if __name__ == "__main__":
    key = jax.random.PRNGKey(0)

    # --- small shape (single tile, padded 16 -> 128 rows) ---------------------
    k1, k2, k3 = jax.random.split(key, 3)
    B, T = 2, 8  # N = B*T = 16 rows, C = 50 classes
    inputs = jax.random.normal(k1, (B, T, CLASS_NUM), dtype=jnp.float32)
    targets = jax.random.randint(k2, (B, T), 0, CLASS_NUM, dtype=jnp.int32)
    weights = jax.random.uniform(k3, (B,), dtype=jnp.float32) + 0.5

    out = jax.block_until_ready(
        focal_loss(inputs, targets, weights, gamma=2.0, size_average=True))
    ref = focal_loss_ref(inputs, targets, weights, gamma=2.0, size_average=True)
    assert jnp.allclose(out, ref, rtol=1e-5, atol=1e-5), (out, ref)

    out_s = jax.block_until_ready(
        focal_loss(inputs, targets, weights, gamma=2.0, size_average=False))
    ref_s = focal_loss_ref(inputs, targets, weights, gamma=2.0, size_average=False)
    assert jnp.allclose(out_s, ref_s, rtol=1e-5, atol=1e-5), (out_s, ref_s)

    # --- multi-tile + ragged padding + tile straddling a batch boundary -------
    k4, k5, k6 = jax.random.split(jax.random.PRNGKey(1), 3)
    B2, T2 = 2, 200  # N = 400 -> tn = 256, grid = 2, 112 padded rows
    inputs2 = jax.random.normal(k4, (B2, T2, CLASS_NUM), dtype=jnp.float32)
    targets2 = jax.random.randint(k5, (B2, T2), 0, CLASS_NUM, dtype=jnp.int32)
    weights2 = jax.random.uniform(k6, (B2,), dtype=jnp.float32) + 0.5

    out2 = jax.block_until_ready(
        focal_loss(inputs2, targets2, weights2, gamma=2.0, size_average=True))
    ref2 = focal_loss_ref(inputs2, targets2, weights2, gamma=2.0, size_average=True)
    assert jnp.allclose(out2, ref2, rtol=1e-5, atol=1e-5), (out2, ref2)

    print("KERNEL_OK")
</pallas_src>

<mosaic_0001>
module attributes {stable_mosaic.version = 11 : i64} {
  func.func @_focal_loss_kernel(%arg0: i32, %arg1: memref<50x128xf32, #tpu.memory_space<vmem>>, %arg2: memref<1x128xi32, #tpu.memory_space<vmem>>, %arg3: memref<1x128xf32, #tpu.memory_space<vmem>>, %arg4: memref<1x1x128xf32, #tpu.memory_space<vmem>>) attributes {dimension_semantics = [#tpu.dimension_semantics<parallel>], iteration_bounds = array<i64: 1>, scalar_prefetch = 0 : i64, scratch_operands = 0 : i64, tpu.core_type = #tpu.core_type<tc>, window_params = [{transform_indices = @transform_0, window_bounds = array<i64: 50, 128>}, {transform_indices = @transform_1, window_bounds = array<i64: 1, 128>}, {transform_indices = @transform_2, window_bounds = array<i64: 1, 128>}, {transform_indices = @transform_3, window_bounds = array<i64: 1, 1, 128>}]} {
    %c0 = arith.constant 0 : index
    %c0_0 = arith.constant 0 : index
    %0 = vector.load %arg1[%c0, %c0_0] : memref<50x128xf32, #tpu.memory_space<vmem>>, vector<50x128xf32>
    %c0_1 = arith.constant 0 : index
    %c0_2 = arith.constant 0 : index
    %1 = vector.load %arg2[%c0_1, %c0_2] : memref<1x128xi32, #tpu.memory_space<vmem>>, vector<1x128xi32>
    %c0_3 = arith.constant 0 : index
    %c0_4 = arith.constant 0 : index
    %2 = vector.load %arg3[%c0_3, %c0_4] : memref<1x128xf32, #tpu.memory_space<vmem>>, vector<1x128xf32>
    %cst = arith.constant dense<0xFF800000> : vector<128xf32>
    %3 = vector.multi_reduction <maximumf>, %0, %cst [0] : vector<50x128xf32> to vector<128xf32>
    %4 = vector.shape_cast %3 : vector<128xf32> to vector<1x128xf32>
    %5 = vector.broadcast %4 : vector<1x128xf32> to vector<50x128xf32>
    %6 = arith.subf %0, %5 : vector<50x128xf32>
    %7 = math.exp %6 : vector<50x128xf32>
    %cst_5 = arith.constant dense<0.000000e+00> : vector<128xf32>
    %8 = vector.multi_reduction <add>, %7, %cst_5 [0] : vector<50x128xf32> to vector<128xf32>
    %9 = vector.shape_cast %8 : vector<128xf32> to vector<1x128xf32>
    %10 = tpu.iota {dimensions = array<i32: 0>} : vector<50x128xi32>
    %11 = vector.broadcast %1 : vector<1x128xi32> to vector<50x128xi32>
    %12 = arith.cmpi eq, %10, %11 : vector<50x128xi32>
    %cst_6 = arith.constant 0.000000e+00 : f32
    %13 = vector.broadcast %cst_6 : f32 to vector<50x128xf32>
    %14 = arith.select %12, %0, %13 : vector<50x128xi1>, vector<50x128xf32>
    %cst_7 = arith.constant dense<0.000000e+00> : vector<128xf32>
    %15 = vector.multi_reduction <add>, %14, %cst_7 [0] : vector<50x128xf32> to vector<128xf32>
    %16 = vector.shape_cast %15 : vector<128xf32> to vector<1x128xf32>
    %17 = arith.subf %16, %4 : vector<1x128xf32>
    %18 = math.log %9 : vector<1x128xf32>
    %19 = arith.subf %17, %18 : vector<1x128xf32>
    %20 = math.exp %19 : vector<1x128xf32>
    %cst_8 = arith.constant 1.000000e+00 : f32
    %21 = vector.broadcast %cst_8 : f32 to vector<1x128xf32>
    %22 = arith.subf %21, %20 : vector<1x128xf32>
    %cst_9 = arith.constant 1.000000e+00 : f32
    %23 = vector.broadcast %cst_9 : f32 to vector<1x128xf32>
    %24 = arith.mulf %23, %22 : vector<1x128xf32>
    %25 = arith.mulf %24, %22 : vector<1x128xf32>
    %cst_10 = arith.constant 0.000000e+00 : f32
    %26 = vector.broadcast %cst_10 : f32 to vector<1x128xf32>
    %27 = arith.subf %26, %25 : vector<1x128xf32>
    %28 = arith.mulf %27, %19 : vector<1x128xf32>
    %29 = arith.mulf %28, %2 : vector<1x128xf32>
    %30 = vector.shape_cast %29 : vector<1x128xf32> to vector<1x1x128xf32>
    %cst_11 = arith.constant dense<0.000000e+00> : vector<1xf32>
    %31 = vector.multi_reduction <add>, %30, %cst_11 [1, 2] : vector<1x1x128xf32> to vector<1xf32>
    %32 = vector.shape_cast %31 : vector<1xf32> to vector<1x1x1xf32>
    %33 = vector.extract %32[0, 0, 0] : f32 from vector<1x1x1xf32>
    %34 = vector.broadcast %33 : f32 to vector<1x1x128xf32>
    %c0_12 = arith.constant 0 : index
    %c0_13 = arith.constant 0 : index
    %c0_14 = arith.constant 0 : index
    %35 = vector.load %arg4[%c0_12, %c0_13, %c0_14] : memref<1x1x128xf32, #tpu.memory_space<vmem>>, vector<1x1x128xf32>
    tpu.vector_store %arg4[%c0_12, %c0_13, %c0_14], %34 {strides = array<i32>} : memref<1x1x128xf32, #tpu.memory_space<vmem>>, vector<1x1x128xf32>,
    return
  }
  func.func @transform_0(%arg0: i32) -> (i32, i32) {
    %c0_i32 = arith.constant 0 : i32
    %c0_i32_0 = arith.constant 0 : i32
    return %c0_i32, %arg0 : i32, i32
  }
  func.func @transform_1(%arg0: i32) -> (i32, i32) {
    %c0_i32 = arith.constant 0 : i32
    %c0_i32_0 = arith.constant 0 : i32
    return %c0_i32, %arg0 : i32, i32
  }
  func.func @transform_2(%arg0: i32) -> (i32, i32) {
    %c0_i32 = arith.constant 0 : i32
    %c0_i32_0 = arith.constant 0 : i32
    return %c0_i32, %arg0 : i32, i32
  }
  func.func @transform_3(%arg0: i32) -> (i32, i32, i32) {
    %c0_i32 = arith.constant 0 : i32
    %c0_i32_0 = arith.constant 0 : i32
    %c0_i32_1 = arith.constant 0 : i32
    return %arg0, %c0_i32, %c0_i32_0 : i32, i32, i32
  }
}

</mosaic_0001>

<bundles_post_ra>
// kernel: tpu_custom_call.1
= control target key start
LH: loop header
LB: loop body
LE: loop exit
PB: predicated region body
PF: predicated region fallthrough
CT: control target
= control target key end

     0   :  { %8 = vsyncpa [#allocation3], 0  ;;  %s314_s0 = inlined_call_operand.hbm [shape: f32[50,128], index: 0, kind: input, shape index: {}]   ;;  %s315_s1 = inlined_call_operand.vmem [shape: s32[1,128], index: 1, kind: input, shape index: {}]   ;;  %s316_s2 = inlined_call_operand.vmem [shape: f32[1,128], index: 2, kind: input, shape index: {}]   ;;  %s317_s3 = inlined_call_operand.hbm [shape: f32[1,1,128], index: 3, kind: output, shape index: {}]  }
   0x1   :  { %9 = vsyncpa [#allocation4], 0  ;;  %s237_s12 = smov [#allocation2]   ;;  %s189_s16 = scalar_lea.hbm %s314_s0, 896 }
   0x2   :  { %s15_s13 = sshll.u32 %s237_s12, 4  ;;  %p190_p0 = scmp.ne.s32.totalorder %s314_s0, %s189_s16  ;;  %s16_s13 = int_to_ptr.vmem [resolvable:$true] %s15_s13 }
   0x3   :  { %p193_p1 = scmp.lt.u32.totalorder %s189_s16, %s314_s0 }
   0x5   :  { %p195_p2 = pnand %p193_p1, %p190_p0 }
   0x7   :  { %198 = shalt.err (!%p195_p2)
}
   0x8   :  { %s199_s21 = scalar_lea.vmem %s16_s13, 896  ;;  %p204_p4 = scmp.lt.s32.totalorder %s16_s13, %s16_s13 }
   0x9   :  { %p200_p3 = scmp.ne.s32.totalorder %s16_s13, %s199_s21  ;;  %p205_p5 = scmp.lt.s32.totalorder %s199_s21, %s199_s21 }
   0xb   :  { %p206_p6 = por %p205_p5, %p204_p4 }
   0xd   :  { %p207_p7 = pnand %p206_p6, %p200_p3 }
   0xf   :  { %210 = shalt.err (!%p207_p7)
}
  0x10   :  { %s238_s22 = smov 128   ;;  %s239_s23 = smov 8  }
  0x11   :  { %21 = dma.hbm_to_vmem [thread:$0]  %s314_s0, 896, %s16_s13, [#allocation3], %s238_s22, %s238_s22, %s239_s23  }
  0x12   :  { %233 = dma.done.wait [#allocation3], 896  }
  0x13   :  { %234 = vsyncadd [#allocation3], 4294966400  ;;  %v29_v0 = vld [vmem:[#allocation2] sm:$0xff]  ;;  %v30_v1 = vld [vmem:[#allocation2 + $0x8] sm:$0xff]  ;;  %vm40_vm0 = vcmask 1041408   ;;  %v86_v12 = vlaneseq  ;;  %vm136_vm8 = vcmask 1040384  }
  0x14   :  { %v31_v2 = vld [vmem:[#allocation2 + $0x10] sm:$0xff]  ;;  %v33_v3 = vld [vmem:[#allocation2 + $0x20] sm:$0xff]  ;;  %v273_v4 = vld [vmem:[#allocation2 + $0x28] sm:$0xff]  ;;  %s240_s28 = smov [#allocation5]  }
  0x15   :  { %v275_v5 = vld [vmem:[#allocation2 + $0x30] sm:$0x3]  ;;  %v38_v6 = vmax.f32 %v29_v0, %v33_v3  ;;  %v39_v7 = vmax.f32 %v30_v1, %v273_v4  ;;  %v32_v8 = vld [vmem:[#allocation2 + $0x18] sm:$0xff]  ;;  %v87_v15 = vshrl.u32 %v86_v12, 7  ;;  %v164_v19 = vld [vmem:[%s315_s1] ss:$0 sm:$0xff] }
  0x16   :  { %v41_v9 = vsel %vm40_vm0, %v275_v5, -inf  ;;  %s155_s29 = sshll.u32 %s240_s28, 4  ;;  %s156_s29 = int_to_ptr.vmem [resolvable:$true] %s155_s29 }
  0x17   :  { %v42_v10 = vmax.f32 %v31_v2, %v41_v9  ;;  %v43_v11 = vmax.f32 %v38_v6, %v39_v7  ;;  %v88_v18 = vadd.s32 8, %v87_v15  ;;  %v89_v22 = vadd.s32 16, %v87_v15  ;;  %s215_s4 = scalar_lea.vmem %s156_s29, 32  ;;  %p216_p9 = scmp.lt.s32.totalorder %s156_s29, %s156_s29 }
  0x18   :  { %vm98_vm1 = vcmp.eq.s32.totalorder %v87_v15, %v164_v19  ;;  %v90_v27 = vadd.s32 24, %v87_v15  ;;  %v91_v41 = vadd.s32 32, %v87_v15  ;;  %v92_v47 = vadd.s32 40, %v87_v15 }
  0x19   :  { %v44_v13 = vmax.f32 %v42_v10, %v32_v8  ;;  %vm99_vm2 = vcmp.eq.s32.totalorder %v88_v18, %v164_v19  ;;  %vm100_vm3 = vcmp.eq.s32.totalorder %v89_v22, %v164_v19  ;;  %v105_v25 = vsel %vm98_vm1, %v29_v0, 0.0 }
  0x1a   :  { %v106_v26 = vsel %vm99_vm2, %v30_v1, 0.0  ;;  %v107_v33 = vsel %vm100_vm3, %v31_v2, 0.0  ;;  %vm101_vm4 = vcmp.eq.s32.totalorder %v90_v27, %v164_v19  ;;  %vm102_vm5 = vcmp.eq.s32.totalorder %v91_v41, %v164_v19 }
  0x1b   :  { %v45_v14 = vmax.f32 %v43_v11, %v44_v13  ;;  %v112_v34 = vadd.f32 %v106_v26, %v105_v25  ;;  %v108_v45 = vsel %vm101_vm4, %v32_v8, 0.0  ;;  %v93_v48 = vadd.s32 48, %v87_v15 }
  0x1c   :  { %v109_v50 = vsel %vm102_vm5, %v33_v3, 0.0  ;;  %vm103_vm6 = vcmp.eq.s32.totalorder %v92_v47, %v164_v19 }
  0x1d   :  { %v46_v16 = vrot.slane %v45_v14, 4  ;;  %v113_v43 = vadd.f32 %v112_v34, %v107_v33  ;;  %vm104_vm7 = vcmp.eq.s32.totalorder %v93_v48, %v164_v19  ;;  %v110_v53 = vsel %vm103_vm6, %v273_v4, 0.0 }
  0x1e   :  { %v111_v55 = vsel %vm104_vm7, %v275_v5, 0.0 }
  0x1f   :  { %v47_v17 = vmax.f32 %v45_v14, %v46_v16  ;;  %v114_v49 = vadd.f32 %v113_v43, %v108_v45  ;;  %v117_v61 = vsel %vm40_vm0, %v111_v55, 0.0 }
  0x21   :  { %v48_v20 = vrot.slane %v47_v17, 2  ;;  %v115_v51 = vadd.f32 %v114_v49, %v109_v50 }
  0x23   :  { %v49_v21 = vmax.f32 %v47_v17, %v48_v20  ;;  %v116_v59 = vadd.f32 %v115_v51, %v110_v53 }
  0x25   :  { %v50_v23 = vrot.slane %v49_v21, 1 }
  0x27   :  { %v283_v24 = vmax.f32 %v49_v21, %v50_v23 }
  0x29   :  { %v52_v28 = vsub.f32 %v29_v0, %v283_v24  ;;  %v53_v29 = vsub.f32 %v30_v1, %v283_v24  ;;  %v54_v30 = vsub.f32 %v31_v2, %v283_v24  ;;  %v55_v31 = vsub.f32 %v32_v8, %v283_v24 }
  0x2a   :  { %v56_v32 = vsub.f32 %v33_v3, %v283_v24  ;;  %v58_v35 = vsub.f32 %v275_v5, %v283_v24  ;;  %v57_v39 = vsub.f32 %v273_v4, %v283_v24  ;;  %v118_v2 = vadd.f32 %v117_v61, %v116_v59 }
  0x2b   :  { %v59_v36 = vmul.f32 1.442695, %v52_v28  ;;  %v61_v37 = vmul.f32 1.442695, %v53_v29  ;;  %v63_v38 = vmul.f32 1.442695, %v54_v30 }
  0x2c   :  { %v65_v40 = vmul.f32 1.442695, %v55_v31  ;;  %v67_v42 = vmul.f32 1.442695, %v56_v32  ;;  %v71_v44 = vmul.f32 1.442695, %v58_v35 }
  0x2d   :  { %171 = vpow2.f32 %v59_v36  ;;  %v69_v46 = vmul.f32 1.442695, %v57_v39  ;;  %v119_v4 = vrot.slane %v118_v2, 4  ;;  %v37_v29 = vld [vmem:[%s316_s2] sm:$0x1]  ;;  %s211_s2 = scalar_lea.vmem %s156_s29, 16 }
  0x2e   :  { %173 = vpow2.f32 %v61_v37  ;;  %p212_p8 = scmp.ne.s32.totalorder %s156_s29, %s211_s2  ;;  %p217_p10 = scmp.lt.s32.totalorder %s215_s4, %s211_s2 }
  0x2f   :  { %175 = vpow2.f32 %v63_v38  ;;  %v120_v5 = vadd.f32 %v119_v4, %v118_v2 }
  0x30   :  { %177 = vpow2.f32 %v65_v40  ;;  %p218_p11 = por %p217_p10, %p216_p9 }
  0x31   :  { %179 = vpow2.f32 %v67_v42  ;;  %v121_v12 = vrot.slane %v120_v5, 2 }
  0x32   :  { %181 = vpow2.f32 %v71_v44  ;;  %p219_p12 = pnand %p218_p11, %p212_p8 }
  0x33   :  { %183 = vpow2.f32 %v69_v46  ;;  %v122_v15 = vadd.f32 %v121_v12, %v120_v5 }
  0x35   :  { %v123_v17 = vrot.slane %v122_v15, 1 }
  0x37   :  { %v172_v52 = vpop.eup %171  ;;  %v124_v18 = vadd.f32 %v123_v17, %v122_v15 }
  0x38   :  { %v174_v54 = vpop.eup %173 }
  0x39   :  { %v176_v56 = vpop.eup %175  ;;  %v73_v57 = vadd.f32 %v174_v54, %v172_v52  ;;  %v125_v19 = vsub.f32 %v124_v18, %v283_v24 }
  0x3a   :  { %v178_v58 = vpop.eup %177 }
  0x3b   :  { %v74_v60 = vadd.f32 %v176_v56, %v73_v57  ;;  %v180_v62 = vpop.eup %179 }
  0x3c   :  { %v182_v63 = vpop.eup %181 }
  0x3d   :  { %v75_v0 = vadd.f32 %v178_v58, %v74_v60  ;;  %v184_v1 = vpop.eup %183  ;;  %v78_v6 = vsel %vm40_vm0, %v182_v63, 0.0 }
  0x3f   :  { %v76_v3 = vadd.f32 %v180_v62, %v75_v0 }
  0x41   :  { %v77_v7 = vadd.f32 %v184_v1, %v76_v3 }
  0x43   :  { %v79_v8 = vadd.f32 %v78_v6, %v77_v7 }
  0x45   :  { %v80_v9 = vrot.slane %v79_v8, 4 }
  0x47   :  { %v81_v10 = vadd.f32 %v80_v9, %v79_v8 }
  0x49   :  { %v82_v11 = vrot.slane %v81_v10, 2 }
  0x4b   :  { %v83_v13 = vadd.f32 %v82_v11, %v81_v10 }
  0x4d   :  { %v84_v14 = vrot.slane %v83_v13, 1 }
  0x4f   :  { %v85_v16 = vadd.f32 %v84_v14, %v83_v13 }
  0x51   :  { %185 = vlog2.f32 %v85_v16 }
  0x5b   :  { %v186_v20 = vpop.eup %185 }
  0x5c   :  { %v127_v21 = vmul.f32 0.6931472, %v186_v20 }
  0x5e   :  { %v128_v22 = vsub.f32 %v125_v19, %v127_v21 }
  0x60   :  { %v129_v23 = vmul.f32 1.442695, %v128_v22 }
  0x62   :  { %187 = vpow2.f32 %v129_v23 }
  0x6c   :  { %v188_v25 = vpop.eup %187 }
  0x6d   :  { %v131_v26 = vsub.f32 1.0, %v188_v25 }
  0x6f   :  { %v132_v27 = vmul.f32 %v131_v26, %v131_v26 }
  0x71   :  { %v133_v28 = vsub.f32 0.0, %v132_v27 }
  0x73   :  { %v134_v30 = vmul.f32 %v133_v28, %v128_v22 }
  0x75   :  { %v135_v31 = vmul.f32 %v134_v30, %v37_v29 }
  0x77   :  { %v137_v32 = vsel %vm136_vm8, %v135_v31, 0.0 }
  0x78   :  { %138 = vadd.xlane.f32.xlu0 %v137_v32 }
 0x105   :  { %v139_v33 = vpop.xlane.xlu0 %138 }
 0x106   :  { %v140_v24 = vrot.slane %v139_v33, 4 }
 0x108   :  { %v141_v34 = vadd.f32 %v140_v24, %v139_v33 }
 0x10a   :  { %v142_v35 = vrot.slane %v141_v34, 2 }
 0x10c   :  { %v143_v36 = vadd.f32 %v142_v35, %v141_v34 }
 0x10e   :  { %v144_v37 = vrot.slane %v143_v36, 1 }
 0x110   :  { %v145_v38 = vadd.f32 %v144_v37, %v143_v36 }
 0x112   :  { %165 = vpush %v145_v38 }
 0x143   :  { %s166_s30 = spop %165 }
 0x144   :  { %v147_v39 = vstv %s166_s30 }
 0x145   :  { %148 = vst [vmem:[#allocation5] sm:$0x1] %v147_v39 }
 0x146   :  { %222 = shalt.err (!%p219_p12)
}
 0x147   :  { %s223_s7 = scalar_lea.hbm %s317_s3, 16 }
 0x148   :  { %p224_p13 = scmp.ne.s32.totalorder %s317_s3, %s223_s7  ;;  %p227_p0 = scmp.lt.u32.totalorder %s223_s7, %s317_s3 }
 0x14a   :  { %p229_p1 = pnand %p227_p0, %p224_p13 }
 0x14c   :  { %232 = shalt.err (!%p229_p1)
}
 0x14d   :  { %158 = dma.vmem_to_hbm [thread:$0]  %s156_s29, 16, %s317_s3, [#allocation4]  }
 0x14e   :  { %235 = dma.done.wait [#allocation4], 16  }
 0x14f   :  { %236 = vsyncadd [#allocation4], 4294967280 }
 0x150   :  { %162 = vsyncpa [#allocation3], 1 }
 0x151   :  { %163 = vsyncpa [#allocation4], 1 }

</bundles_post_ra>
